<compile_context>
chip_gen: v5e
topology: v5e:2x2
jax: 0.10.0
libtpu: 0.0.40
codegen_flags: <defaults>
</compile_context>

<pallas_src>
import math
import functools

import jax
import jax.numpy as jnp
from jax.experimental import pallas as pl
from jax.experimental.pallas import tpu as pltpu

GAMMA = math.log(10 + 1)   # module default: gamma=10 -> log(gamma+1)
ALPHA = 0.25               # module default

LANES = 128
SUBLANES = 8
MAX_TR = 1024              # rows per grid step (1024x128 f32 = 512 KiB/block)
NC = 2                     # leading "parallel" axis (2 TCs on v7x)


def _focal_loss_kernel(nv_ref, x_ref, t_ref, out_ref, acc_ref, *,
                       gamma, alpha, tr, g_half):
    """One grid step: focal-BCE on a (tr, 128) tile, accumulate per-lane sums."""
    c = pl.program_id(0)           # core-split axis ("parallel")
    i = pl.program_id(1)           # reduction axis ("arbitrary")

    @pl.when(i == 0)
    def _():
        acc_ref[...] = jnp.zeros_like(acc_ref)

    x = x_ref[...].astype(jnp.float32)
    t = t_ref[...].astype(jnp.float32)

    # log-sigmoid formulation (robust for large |x|, fewer transcendentals):
    #   log_pt   = log sigmoid(x)  = min(x, 0)  - log1p(exp(-|x|))
    #   log_1mpt = log sigmoid(-x) = min(-x, 0) - log1p(exp(-|x|))
    #   (1-pt)^g = exp(g*log_1mpt),  pt^g = exp(g*log_pt)
    sp = jnp.log1p(jnp.exp(-jnp.abs(x)))
    log_pt = jnp.minimum(x, 0.0) - sp
    log_1m_pt = jnp.minimum(-x, 0.0) - sp

    loss = (-alpha * jnp.exp(gamma * log_1m_pt) * t * log_pt
            - (1.0 - alpha) * jnp.exp(gamma * log_pt) * (1.0 - t) * log_1m_pt)

    # In-kernel validity mask (covers pad elements, partial last block, and
    # the fully-out-of-range blocks of the core-split axis).
    blk = c * g_half + i                        # logical block index
    row0 = blk * tr
    row_ids = jax.lax.broadcasted_iota(jnp.int32, (tr, LANES), 0)
    col_ids = jax.lax.broadcasted_iota(jnp.int32, (tr, LANES), 1)
    gidx = (row0 + row_ids) * LANES + col_ids
    loss = jnp.where(gidx < nv_ref[0], loss, 0.0)

    # Per-lane accumulation: pure VPU adds (cross-lane reduce deferred).
    acc_ref[...] += loss.reshape(tr // SUBLANES, SUBLANES, LANES).sum(axis=0)

    @pl.when(i == pl.num_programs(1) - 1)
    def _():
        out_ref[0] = acc_ref[...]


def bce_focal_loss(_input, target, *, gamma=GAMMA, alpha=ALPHA,
                   reduction="elementwise_mean"):
    """Pallas TPU implementation of BCEFocalLoss.forward."""
    assert _input.shape == target.shape
    n = int(_input.size)

    x = _input.reshape(-1)
    t = target.reshape(-1)

    # Pad only when the flat size is not already a multiple of 8*128 (adds at
    # most 1023 elements; zero copies in the common aligned case).
    pad = (-n) % (SUBLANES * LANES)
    if pad:
        x = jnp.pad(x, (0, pad))
        t = jnp.pad(t, (0, pad))
    total = n + pad
    rows = total // LANES                      # multiple of 8
    tr = min(MAX_TR, rows)                     # block rows (multiple of 8)
    g_total = pl.cdiv(rows, tr)                # real row-blocks
    g_half = pl.cdiv(g_total, NC)              # row-blocks per core

    x2 = x.reshape(rows, LANES)
    t2 = t.reshape(rows, LANES)
    nv = jnp.array([n], dtype=jnp.int32)       # SMEM scalar: true element count

    kernel = functools.partial(_focal_loss_kernel,
                               gamma=float(gamma), alpha=float(alpha),
                               tr=tr, g_half=g_half)

    # Clamp the block index so the DMA never targets a non-existent block; the
    # in-kernel iota mask (built from the *logical* index) zeroes any overhang.
    def in_map(c, i, nv_sm):
        return (jnp.minimum(c * g_half + i, g_total - 1), 0)

    tile_spec = pl.BlockSpec((tr, LANES), in_map)

    out = pl.pallas_call(
        kernel,
        out_shape=jax.ShapeDtypeStruct((NC, SUBLANES, LANES), jnp.float32),
        grid_spec=pltpu.PrefetchScalarGridSpec(
            num_scalar_prefetch=1,
            grid=(NC, g_half),
            in_specs=[tile_spec, tile_spec],
            out_specs=pl.BlockSpec((1, SUBLANES, LANES),
                                   lambda c, i, nv_sm: (c, 0, 0)),
            scratch_shapes=[pltpu.VMEM((SUBLANES, LANES), jnp.float32)],
        ),
        compiler_params=pltpu.CompilerParams(
            dimension_semantics=("parallel", "arbitrary")),
    )(nv, x2, t2)

    total_sum = jnp.sum(out)                   # single epilogue reduction
    if reduction == "elementwise_mean":
        return total_sum / jnp.float32(n)
    elif reduction == "sum":
        return total_sum                       # exact: raw accumulated sum
    else:
        # TODO(synk): 'none' reduction would need the full per-element loss map;
        # this kernel only materializes the reduced scalar.
        raise NotImplementedError(reduction)


def _reference(_input, target, gamma=GAMMA, alpha=ALPHA):
    """Literal (naive) port of the PyTorch forward, for validation."""
    pt = jax.nn.sigmoid(_input.astype(jnp.float32))
    t = target.astype(jnp.float32)
    loss = (-alpha * (1 - pt) ** gamma * t * jnp.log(pt)
            - (1 - alpha) * pt ** gamma * (1 - t) * jnp.log(1 - pt))
    return jnp.mean(loss)


if __name__ == "__main__":
    key = jax.random.PRNGKey(0)

    # Case 1: NCHW-like logits/targets, size a multiple of 1024 (no padding).
    k1, k2, key = jax.random.split(key, 3)
    x1 = jax.random.normal(k1, (2, 4, 16, 16), dtype=jnp.float32)
    t1 = (jax.random.uniform(k2, (2, 4, 16, 16)) > 0.5).astype(jnp.float32)
    out1 = jax.block_until_ready(bce_focal_loss(x1, t1))
    ref1 = _reference(x1, t1)
    assert jnp.allclose(out1, ref1, rtol=2e-4, atol=1e-6), (out1, ref1)

    # Case 2: ragged size (105 elements) -> exercises in-kernel iota masking.
    k1, k2, key = jax.random.split(key, 3)
    x2 = jax.random.normal(k1, (3, 5, 7), dtype=jnp.float32)
    t2 = (jax.random.uniform(k2, (3, 5, 7)) > 0.5).astype(jnp.float32)
    out2 = jax.block_until_ready(bce_focal_loss(x2, t2))
    ref2 = _reference(x2, t2)
    assert jnp.allclose(out2, ref2, rtol=2e-4, atol=1e-6), (out2, ref2)

    # Case 3: multi-block grid with partial last block + 2-way core split.
    k1, k2, key = jax.random.split(key, 3)
    x3 = jax.random.normal(k1, (2, 4, 330, 128), dtype=jnp.float32)
    t3 = (jax.random.uniform(k2, (2, 4, 330, 128)) > 0.5).astype(jnp.float32)
    out3 = jax.block_until_ready(bce_focal_loss(x3, t3))
    ref3 = _reference(x3, t3)
    assert jnp.allclose(out3, ref3, rtol=2e-4, atol=1e-6), (out3, ref3)

    print("KERNEL_OK")
</pallas_src>

<mosaic_0001>
module attributes {stable_mosaic.version = 11 : i64} {
  func.func @_focal_loss_kernel(%arg0: i32, %arg1: i32, %arg2: memref<1xi32, #tpu.memory_space<smem>>, %arg3: memref<16x128xf32, #tpu.memory_space<vmem>>, %arg4: memref<16x128xf32, #tpu.memory_space<vmem>>, %arg5: memref<1x8x128xf32, #tpu.memory_space<vmem>>, %arg6: memref<8x128xf32, #tpu.memory_space<vmem>>) attributes {dimension_semantics = [#tpu.dimension_semantics<parallel>, #tpu.dimension_semantics<arbitrary>], iteration_bounds = array<i64: 2, 1>, scalar_prefetch = 1 : i64, scratch_operands = 1 : i64, tpu.core_type = #tpu.core_type<tc>, window_params = [{transform_indices = @transform_0, window_bounds = array<i64: 16, 128>}, {transform_indices = @transform_1, window_bounds = array<i64: 16, 128>}, {transform_indices = @transform_2, window_bounds = array<i64: 1, 8, 128>}]} {
    %c0_i32 = arith.constant 0 : i32
    %0 = arith.cmpi eq, %arg1, %c0_i32 : i32
    %1 = arith.extui %0 : i1 to i32
    %c0_i32_0 = arith.constant 0 : i32
    %2 = arith.cmpi ne, %1, %c0_i32_0 : i32
    scf.if %2 {
      %cst_21 = arith.constant 0.000000e+00 : f32
      %58 = vector.broadcast %cst_21 : f32 to vector<8x128xf32>
      %c0_22 = arith.constant 0 : index
      %c0_23 = arith.constant 0 : index
      %59 = vector.load %arg6[%c0_22, %c0_23] : memref<8x128xf32, #tpu.memory_space<vmem>>, vector<8x128xf32>
      tpu.vector_store %arg6[%c0_22, %c0_23], %58 {strides = array<i32>} : memref<8x128xf32, #tpu.memory_space<vmem>>, vector<8x128xf32>,
    } else {
    }
    %c0 = arith.constant 0 : index
    %c0_1 = arith.constant 0 : index
    %3 = vector.load %arg3[%c0, %c0_1] : memref<16x128xf32, #tpu.memory_space<vmem>>, vector<16x128xf32>
    %c0_2 = arith.constant 0 : index
    %c0_3 = arith.constant 0 : index
    %4 = vector.load %arg4[%c0_2, %c0_3] : memref<16x128xf32, #tpu.memory_space<vmem>>, vector<16x128xf32>
    %5 = math.absf %3 : vector<16x128xf32>
    %cst = arith.constant 0.000000e+00 : f32
    %6 = vector.broadcast %cst : f32 to vector<16x128xf32>
    %7 = arith.subf %6, %5 : vector<16x128xf32>
    %8 = math.exp %7 : vector<16x128xf32>
    %9 = math.log1p %8 : vector<16x128xf32>
    %cst_4 = arith.constant 0.000000e+00 : f32
    %10 = vector.broadcast %cst_4 : f32 to vector<16x128xf32>
    %11 = arith.minimumf %3, %10 : vector<16x128xf32>
    %12 = arith.subf %11, %9 : vector<16x128xf32>
    %cst_5 = arith.constant 0.000000e+00 : f32
    %13 = vector.broadcast %cst_5 : f32 to vector<16x128xf32>
    %14 = arith.subf %13, %3 : vector<16x128xf32>
    %cst_6 = arith.constant 0.000000e+00 : f32
    %15 = vector.broadcast %cst_6 : f32 to vector<16x128xf32>
    %16 = arith.minimumf %14, %15 : vector<16x128xf32>
    %17 = arith.subf %16, %9 : vector<16x128xf32>
    %cst_7 = arith.constant 2.39789534 : f32
    %18 = vector.broadcast %cst_7 : f32 to vector<16x128xf32>
    %19 = arith.mulf %18, %17 : vector<16x128xf32>
    %20 = math.exp %19 : vector<16x128xf32>
    %cst_8 = arith.constant -2.500000e-01 : f32
    %21 = vector.broadcast %cst_8 : f32 to vector<16x128xf32>
    %22 = arith.mulf %21, %20 : vector<16x128xf32>
    %23 = arith.mulf %22, %4 : vector<16x128xf32>
    %24 = arith.mulf %23, %12 : vector<16x128xf32>
    %cst_9 = arith.constant 2.39789534 : f32
    %25 = vector.broadcast %cst_9 : f32 to vector<16x128xf32>
    %26 = arith.mulf %25, %12 : vector<16x128xf32>
    %27 = math.exp %26 : vector<16x128xf32>
    %cst_10 = arith.constant 7.500000e-01 : f32
    %28 = vector.broadcast %cst_10 : f32 to vector<16x128xf32>
    %29 = arith.mulf %28, %27 : vector<16x128xf32>
    %cst_11 = arith.constant 1.000000e+00 : f32
    %30 = vector.broadcast %cst_11 : f32 to vector<16x128xf32>
    %31 = arith.subf %30, %4 : vector<16x128xf32>
    %32 = arith.mulf %29, %31 : vector<16x128xf32>
    %33 = arith.mulf %32, %17 : vector<16x128xf32>
    %34 = arith.subf %24, %33 : vector<16x128xf32>
    %c1_i32 = arith.constant 1 : i32
    %35 = arith.muli %arg0, %c1_i32 : i32
    %36 = arith.addi %35, %arg1 : i32
    %c16_i32 = arith.constant 16 : i32
    %37 = arith.muli %36, %c16_i32 : i32
    %38 = tpu.iota {dimensions = array<i32: 0>} : vector<16x128xi32>
    %39 = tpu.iota {dimensions = array<i32: 1>} : vector<16x128xi32>
    %40 = vector.broadcast %37 : i32 to vector<16x128xi32>
    %41 = arith.addi %40, %38 : vector<16x128xi32>
    %c128_i32 = arith.constant 128 : i32
    %42 = vector.broadcast %c128_i32 : i32 to vector<16x128xi32>
    %43 = arith.muli %41, %42 : vector<16x128xi32>
    %44 = arith.addi %43, %39 : vector<16x128xi32>
    %c0_12 = arith.constant 0 : index
    %45 = memref.load %arg2[%c0_12] : memref<1xi32, #tpu.memory_space<smem>>
    %46 = vector.broadcast %45 : i32 to vector<16x128xi32>
    %47 = arith.cmpi slt, %44, %46 : vector<16x128xi32>
    %cst_13 = arith.constant 0.000000e+00 : f32
    %48 = vector.broadcast %cst_13 : f32 to vector<16x128xf32>
    %49 = arith.select %47, %34, %48 : vector<16x128xi1>, vector<16x128xf32>
    %c0_14 = arith.constant 0 : index
    %c0_15 = arith.constant 0 : index
    %50 = vector.load %arg6[%c0_14, %c0_15] : memref<8x128xf32, #tpu.memory_space<vmem>>, vector<8x128xf32>
    %51 = vector.shape_cast %49 : vector<16x128xf32> to vector<2x8x128xf32>
    %cst_16 = arith.constant dense<0.000000e+00> : vector<8x128xf32>
    %52 = vector.multi_reduction <add>, %51, %cst_16 [0] : vector<2x8x128xf32> to vector<8x128xf32>
    %53 = arith.addf %50, %52 : vector<8x128xf32>
    %c0_17 = arith.constant 0 : index
    %c0_18 = arith.constant 0 : index
    %54 = vector.load %arg6[%c0_17, %c0_18] : memref<8x128xf32, #tpu.memory_space<vmem>>, vector<8x128xf32>
    tpu.vector_store %arg6[%c0_17, %c0_18], %53 {strides = array<i32>} : memref<8x128xf32, #tpu.memory_space<vmem>>, vector<8x128xf32>,
    %c0_i32_19 = arith.constant 0 : i32
    %55 = arith.cmpi eq, %arg1, %c0_i32_19 : i32
    %56 = arith.extui %55 : i1 to i32
    %c0_i32_20 = arith.constant 0 : i32
    %57 = arith.cmpi ne, %56, %c0_i32_20 : i32
    scf.if %57 {
      %c0_21 = arith.constant 0 : index
      %c0_22 = arith.constant 0 : index
      %58 = vector.load %arg6[%c0_21, %c0_22] : memref<8x128xf32, #tpu.memory_space<vmem>>, vector<8x128xf32>
      %c0_23 = arith.constant 0 : index
      %c0_24 = arith.constant 0 : index
      %c0_25 = arith.constant 0 : index
      %59 = vector.load %arg5[%c0_23, %c0_24, %c0_25] : memref<1x8x128xf32, #tpu.memory_space<vmem>>, vector<1x8x128xf32>
      %60 = vector.shape_cast %59 : vector<1x8x128xf32> to vector<8x128xf32>
      %61 = vector.shape_cast %58 : vector<8x128xf32> to vector<1x8x128xf32>
      tpu.vector_store %arg5[%c0_23, %c0_24, %c0_25], %61 {strides = array<i32>} : memref<1x8x128xf32, #tpu.memory_space<vmem>>, vector<1x8x128xf32>,
    } else {
    }
    return
  }
  func.func @transform_0(%arg0: i32, %arg1: i32, %arg2: memref<1xi32, #tpu.memory_space<smem>>) -> (i32, i32) {
    %c1_i32 = arith.constant 1 : i32
    %0 = arith.muli %arg0, %c1_i32 : i32
    %1 = arith.addi %0, %arg1 : i32
    %c0_i32 = arith.constant 0 : i32
    %2 = arith.minsi %1, %c0_i32 : i32
    %c0_i32_0 = arith.constant 0 : i32
    %c0_i32_1 = arith.constant 0 : i32
    return %2, %c0_i32_0 : i32, i32
  }
  func.func @transform_1(%arg0: i32, %arg1: i32, %arg2: memref<1xi32, #tpu.memory_space<smem>>) -> (i32, i32) {
    %c1_i32 = arith.constant 1 : i32
    %0 = arith.muli %arg0, %c1_i32 : i32
    %1 = arith.addi %0, %arg1 : i32
    %c0_i32 = arith.constant 0 : i32
    %2 = arith.minsi %1, %c0_i32 : i32
    %c0_i32_0 = arith.constant 0 : i32
    %c0_i32_1 = arith.constant 0 : i32
    return %2, %c0_i32_0 : i32, i32
  }
  func.func @transform_2(%arg0: i32, %arg1: i32, %arg2: memref<1xi32, #tpu.memory_space<smem>>) -> (i32, i32, i32) {
    %c0_i32 = arith.constant 0 : i32
    %c0_i32_0 = arith.constant 0 : i32
    %c0_i32_1 = arith.constant 0 : i32
    return %arg0, %c0_i32, %c0_i32_0 : i32, i32, i32
  }
}

</mosaic_0001>

<bundles_post_ra>
// kernel: tpu_custom_call.1
= control target key start
LH: loop header
LB: loop body
LE: loop exit
PB: predicated region body
PF: predicated region fallthrough
CT: control target
= control target key end

     0   :  { %s971_s0 = inlined_call_operand.<no memory space> [shape: s32[1], index: 0, kind: input, shape index: {}]   ;;  %s972_s1 = inlined_call_operand.hbm [shape: f32[16,128], index: 1, kind: input, shape index: {}]   ;;  %s973_s2 = inlined_call_operand.hbm [shape: f32[16,128], index: 2, kind: input, shape index: {}]   ;;  %s974_s3 = inlined_call_operand.hbm [shape: f32[2,8,128], index: 3, kind: output, shape index: {}]  }
   0x1   :  { %8 = sst [smem:[#allocation4]] %s971_s0 }
   0x2   :  { %9 = vsyncpa [#allocation6], 0 }
   0x3   :  { %11 = vsyncpa [#allocation6 + $0x1], 0 }
   0x4   :  { %12 = vsyncpa [#allocation9], 0 }
   0x5   :  { %14 = vsyncpa [#allocation9 + $0x1], 0 }
   0x6   :  { %15 = vsyncpa [#allocation7], 0 }
   0x7   :  { %17 = vsyncpa [#allocation7 + $0x1], 0  ;;  %s791_s14 = smov 0   ;;  %s793_s15 = smov 0  }
   0x8   :  { %s795_s16 = smov 0   ;;  %s797_s17 = smov 0  }
   0x9   :  { %s799_s18 = smov 0   ;;  %s801_s19 = smov 0  }
   0xa   :  { %s803_s20 = smov 0   ;;  %s805_s0 = smov 0  }
   0xb LB: > { %s465_s21 = sadd.s32 4294967295, %s762_s0   ;;  %s466_s22 = sadd.s32 4294967294, %s762_s0   ;;  %s762_s0 = sphi %s805_s0, %s23_s0   ;;  %s758_s20 = sphi %s803_s20, %s986_s20   ;;  %s754_s19 = sphi %s801_s19, %s985_s19   ;;  %s750_s18 = sphi %s799_s18, %s961_s18   ;;  %s746_s17 = sphi %s797_s17, %s984_s17   ;;  %s742_s16 = sphi %s795_s16, %s983_s16   ;;  %s738_s15 = sphi %s793_s15, %s982_s15   ;;  %s734_s14 = sphi %s791_s14, %s981_s14  }
   0xc   : > { %s35_s23 = sadd.s32 1, %s758_s20  ;;  %p731_p1 = scmp.ne.s32.totalorder %s750_s18, 0 }
   0xd   : > { %p37_p0 = scmp.ge.s32.totalorder %s35_s23, 2  ;;  %p56_p2 = scmp.eq.s32.totalorder %s762_s0, 0 }
   0xe   : > { %p61_p3 = scmp.ne.s32.totalorder %s750_s18, %s746_s17  ;;  %p62_p5 = scmp.eq.s32.totalorder %s465_s21, 0 }
   0xf   : > { %s988_s23 = smov (%p37_p0, %s35_s23), 0  ;;  %p837_p4 = por %p731_p1, %p56_p2 }
  0x10   : > { %p841_p6 = por %p62_p5, %p61_p3  ;;  %s103_s26 = ssub.s32 %s758_s20, %s988_s23 }
  0x11   : > { %p104_p7 = scmp.eq.s32.totalorder %s103_s26, 0  ;;  %s106_s27 = sadd.s32 1, %s742_s16 }
  0x12   : > { %p116_p8 = scmp.ne.s32.totalorder %s742_s16, %s738_s15  ;;  %p117_p9 = scmp.eq.s32.totalorder %s465_s21, 1 }
  0x13   : > { %s849_s28 = scalar_select %p104_p7, %s742_s16, %s106_s27  }
  0x14   : > { %p122_p10 = scmp.ne.s32.totalorder %s738_s15, %s734_s14  ;;  %p123_p11 = scmp.eq.s32.totalorder %s466_s22, 1 }
  0x15   : > { %p855_p12 = por %p117_p9, %p116_p8  ;;  %p468_p13 = scmp.ge.s32.totalorder %s762_s0, 2 }
  0x16   : > { %p860_p0 = por %p123_p11, %p122_p10  ;;  %p503_p1 = scmp.lt.s32.totalorder %s762_s0, 2 }
  0x17   : > { %s156_s6 = sshll.u32 %s972_s1, 4  ;;  %s764_s7 = smov [#allocation5]   ;;  %s157_s6 = int_to_ptr.hbm [resolvable:$true] %s156_s6 }
  0x18   : > { %s158_s8 = sshll.u32 %s764_s7, 4  ;;  %p870_p2 = pnand %p503_p1, %p837_p4  ;;  %s159_s8 = int_to_ptr.vmem [resolvable:$true] %s158_s8 }
  0x19   : > { %p475_p3 = scmp.ge.s32.totalorder %s762_s0, 1  ;;  %p191_p5 = scmp.lt.s32.totalorder %s762_s0, 3 }
  0x1a   : > { %s595_s10 = sshra.s32 %s157_s6, 4  ;;  %p599_p8 = pneg %p870_p2  ;;  %s596_s10 = int_to_ptr.hbm [resolvable:$true] %s595_s10 }
  0x1b   : > { %s597_s11 = scalar_lea.hbm %s596_s10, 16  ;;  %s602_s17 = scalar_lea.hbm %s972_s1, 16 }
  0x1c   : > { %p598_p7 = scmp.ne.s32.totalorder %s596_s10, %s597_s11  ;;  %p604_p4 = scmp.lt.s32.totalorder %s602_s17, %s597_s11 }
  0x1e   : > { %p600_p9 = pnand %p599_p8, %p598_p7 }
  0x20   : > { %p601_p10 = pneg %p600_p9 }
  0x22   : > { %p606_p11 = pnand %p604_p4, %p601_p10 }
  0x24   : > { %609 = shalt.err (!%p606_p11)
}
  0x25   : > { %s765_s21 = smov 128   ;;  %s766_s22 = smov 8  }
  0x26   : > { %495 = dma.hbm_to_vmem [thread:$0]  (!%p870_p2), %s157_s6, 256, %s159_s8, [#allocation6], %s765_s21, %s765_s21, %s766_s22  }
  0x27   : > { %p890_p1 = pnand %p475_p3, %p191_p5  ;;  %s181_s4 = sshll.u32 %s973_s2, 4  ;;  %s182_s4 = int_to_ptr.hbm [resolvable:$true] %s181_s4 }
  0x28   : > { %s767_s5 = smov [#allocation8]   ;;  %s625_s10 = sshra.s32 %s182_s4, 4  ;;  %s626_s10 = int_to_ptr.hbm [resolvable:$true] %s625_s10 }
  0x29   : > { %s183_s7 = sshll.u32 %s767_s5, 4  ;;  %s627_s11 = scalar_lea.hbm %s626_s10, 16  ;;  %s184_s7 = int_to_ptr.vmem [resolvable:$true] %s183_s7 }
  0x2a   : > { %p628_p7 = scmp.ne.s32.totalorder %s626_s10, %s627_s11  ;;  %s632_s12 = scalar_lea.hbm %s973_s2, 16 }
  0x2b   : > { %p634_p3 = scmp.lt.s32.totalorder %s632_s12, %s627_s11 }
  0x2c   : > { %p630_p9 = pnand %p628_p7, %p599_p8 }
  0x2e   : > { %p631_p10 = pneg %p630_p9 }
  0x30   : > { %p636_p5 = pnand %p634_p3, %p631_p10 }
  0x32   : > { %639 = shalt.err (!%p636_p5)
}
  0x33   : > { %498 = dma.hbm_to_vmem [thread:$0]  (!%p870_p2), %s182_s4, 256, %s184_s7, [#allocation9], %s765_s21, %s765_s21, %s766_s22  }
  0x34   : > { %195 = sbr.rel (%p890_p1) target bundleno = 116 (0x74), region = 28  ;;  %s197_s13 = sand.u32 (!%p890_p1), 1, %s750_s18  }
  0x35   : > { %s476_s17 = sshll.u32 (!%p890_p1), %s197_s13, 4  ;;  %s198_s26 = scalar_lea.sflag (!%p890_p1), [#allocation6], %s197_s13 }
  0x36   : > { %s201_s27 = scalar_lea.vmem (!%p890_p1), [#allocation5], %s476_s17 }
  0x39   : > { %720 = dma.done.wait (%p841_p6), %s198_s26, 256  }
  0x3a   : > { %722 = vsyncadd (%p841_p6), %s198_s26, 4294967040  ;;  %s208_s5 = scalar_lea.sflag [#allocation9], %s197_s13  ;;  %s912_s10 = scalar_lea.vmem [#allocation8], %s476_s17 }
  0x3b   : > { %724 = dma.done.wait (%p841_p6), %s208_s5, 256  }
  0x3c   : > { %726 = vsyncadd (%p841_p6), %s208_s5, 4294967040  ;;  %v251_v0 = vld [vmem:[%s201_s27] sm:$0xff]  ;;  %v252_v1 = vld [vmem:[%s201_s27 + $0x8] sm:$0xff]  ;;  %v321_v29 = vlaneseq  ;;  %s479_s25 = sshll.u32 %s754_s19, 4  ;;  %s919_s9 = sld [smem:[#allocation4]] }
  0x3d   : > { %v255_v2 = vand.u32 2147483647, %v251_v0  ;;  %v256_v3 = vand.u32 2147483647, %v252_v1  ;;  %v285_v17 = vsub.f32 0.0, %v251_v0  ;;  %v286_v19 = vsub.f32 0.0, %v252_v1 }
  0x3e   : > { %v281_v21 = vmin.f32 %v251_v0, 0.0  ;;  %v282_v24 = vmin.f32 %v252_v1, 0.0  ;;  %v322_v37 = vshrl.u32 %v321_v29, 7  ;;  %v326_v47 = vstv %s479_s25  ;;  %v253_v50 = vld [vmem:[%s912_s10] sm:$0xff]  ;;  %v254_v51 = vld [vmem:[%s912_s10 + $0x8] sm:$0xff]  ;;  %s235_s21 = sand.u32 1, %s738_s15  }
  0x3f   : > { %v257_v4 = vsub.f32 0.0, %v255_v2  ;;  %v258_v5 = vsub.f32 0.0, %v256_v3  ;;  %v287_v25 = vmin.f32 %v285_v17, 0.0  ;;  %v288_v28 = vmin.f32 %v286_v19, 0.0  ;;  %s478_s22 = sshll.u32 %s235_s21, 3  ;;  %s481_s24 = sshll.u32 %s754_s19, 3 }
  0x40   : > { %v323_v46 = vadd.s32 8, %v322_v37  ;;  %v327_v48 = vadd.s32 %v326_v47, %v322_v37  ;;  %v325_v53 = vand.u32 127, %v321_v29  ;;  %v311_v57 = vsub.f32 1.0, %v253_v50  ;;  %s359_s11 = scalar_lea.hbm %s974_s3, %s481_s24  ;;  %s237_s6 = scalar_lea.vmem [#allocation10], %s478_s22 }
  0x41   : > { %v259_v6 = vmul.f32 1.442695, %v257_v4  ;;  %v261_v7 = vmul.f32 1.442695, %v258_v5  ;;  %v312_v61 = vsub.f32 1.0, %v254_v51  ;;  %s361_s19 = sshll.u32 %s237_s6, 4  ;;  %s362_s19 = int_to_ptr.vmem [resolvable:$true] %s361_s19 }
  0x42   : > { %v328_v49 = vadd.s32 %v326_v47, %v323_v46  ;;  %v329_v54 = vmul.u32 128, %v327_v48  ;;  %s363_s8 = sshll.u32 %s359_s11, 4  ;;  %s349_s12 = scalar_lea.sflag [#allocation7], %s235_s21  ;;  %s364_s8 = int_to_ptr.hbm [resolvable:$true] %s363_s8 }
  0x43   : > { %579 = vpow2.f32 %v259_v6  ;;  %s669_s13 = sshra.s32 %s364_s8, 4  ;;  %s675_s5 = scalar_lea.hbm %s974_s3, 16  ;;  %s670_s13 = int_to_ptr.hbm [resolvable:$true] %s669_s13 }
  0x44   : > { %581 = vpow2.f32 %v261_v7  ;;  %v330_v58 = vmul.u32 128, %v328_v49  ;;  %v331_v3 = vadd.s32 %v329_v54, %v325_v53  ;;  %v334_v7 = vstv %s919_s9  ;;  %s671_s17 = scalar_lea.hbm %s670_s13, 8  ;;  %p676_p4 = scmp.lt.s32.totalorder %s670_s13, %s974_s3 }
  0x45   : > { %p672_p6 = scmp.ne.s32.totalorder %s670_s13, %s671_s17  ;;  %p677_p11 = scmp.lt.s32.totalorder %s675_s5, %s671_s17 }
  0x46   : > { %v332_v6 = vadd.s32 %v330_v58, %v325_v53  ;;  %vm335_vm2 = vcmp.lt.s32.totalorder %v331_v3, %v334_v7 }
  0x47   : > { %p673_p2 = pnand %p672_p6, %p855_p12  ;;  %p678_p1 = por %p677_p11, %p676_p4 }
  0x48   : > { %vm336_vm3 = vcmp.lt.s32.totalorder %v332_v6, %v334_v7 }
  0x49   : > { %v580_v8 = vpop.eup %579  ;;  %p674_p8 = pneg %p673_p2 }
  0x4a   : > { %v582_v9 = vpop.eup %581  ;;  %v263_v10 = vadd.f32 1.0, %v580_v8  ;;  %v266_v11 = vmul.f32 -0.5, %v580_v8  ;;  %v269_v15 = vand.u32 2147483647, %v580_v8 }
  0x4b   : > { %v272_v12 = vadd.f32 1.0, %v582_v9  ;;  %v275_v13 = vmul.f32 -0.5, %v582_v9  ;;  %v278_v18 = vand.u32 2147483647, %v582_v9  ;;  %p679_p7 = pnand %p678_p1, %p674_p8 }
  0x4c   : > { %583 = vlog2.f32 %v263_v10  ;;  %v267_v14 = vadd.f32 1.0, %v266_v11  ;;  %vm270_vm0 = vcmp.lt.f32.partialorder %v269_v15, 0.0004427343 }
  0x4d   : > { %585 = vlog2.f32 %v272_v12  ;;  %v276_v16 = vadd.f32 1.0, %v275_v13  ;;  %vm279_vm1 = vcmp.lt.f32.partialorder %v278_v18, 0.0004427343 }
  0x4e   : > { %v268_v20 = vmul.f32 %v580_v8, %v267_v14 }
  0x4f   : > { %v277_v23 = vmul.f32 %v582_v9, %v276_v16 }
  0x52   : > { %v584_v22 = vpop.eup %583 }
  0x53   : > { %v586_v26 = vpop.eup %585  ;;  %v265_v27 = vmul.f32 0.6931472, %v584_v22 }
  0x54   : > { %v274_v30 = vmul.f32 0.6931472, %v586_v26 }
  0x55   : > { %v271_v31 = vsel %vm270_vm0, %v268_v20, %v265_v27 }
  0x56   : > { %v280_v32 = vsel %vm279_vm1, %v277_v23, %v274_v30  ;;  %v283_v33 = vsub.f32 %v281_v21, %v271_v31  ;;  %v289_v34 = vsub.f32 %v287_v25, %v271_v31 }
  0x57   : > { %v284_v35 = vsub.f32 %v282_v24, %v280_v32  ;;  %v290_v36 = vsub.f32 %v288_v28, %v280_v32 }
  0x58   : > { %v291_v38 = vmul.f32 2.3978953, %v289_v34  ;;  %v303_v39 = vmul.f32 2.3978953, %v283_v33 }
  0x59   : > { %v292_v40 = vmul.f32 2.3978953, %v290_v36  ;;  %v304_v41 = vmul.f32 2.3978953, %v284_v35 }
  0x5a   : > { %v293_v42 = vmul.f32 1.442695, %v291_v38  ;;  %v305_v43 = vmul.f32 1.442695, %v303_v39 }
  0x5b   : > { %v295_v44 = vmul.f32 1.442695, %v292_v40  ;;  %v307_v45 = vmul.f32 1.442695, %v304_v41 }
  0x5c   : > { %587 = vpow2.f32 %v293_v42 }
  0x5d   : > { %589 = vpow2.f32 %v295_v44 }
  0x5e   : > { %591 = vpow2.f32 %v305_v43 }
  0x5f   : > { %593 = vpow2.f32 %v307_v45 }
  0x62   : > { %v588_v52 = vpop.eup %587 }
  0x63   : > { %v590_v55 = vpop.eup %589  ;;  %v297_v56 = vmul.f32 -0.25, %v588_v52 }
  0x64   : > { %v592_v59 = vpop.eup %591  ;;  %v298_v60 = vmul.f32 -0.25, %v590_v55 }
  0x65   : > { %v594_v62 = vpop.eup %593  ;;  %v299_v63 = vmul.f32 %v297_v56, %v253_v50  ;;  %v309_v0 = vmul.f32 0.75, %v592_v59 }
  0x66   : > { %v300_v1 = vmul.f32 %v298_v60, %v254_v51  ;;  %v310_v2 = vmul.f32 0.75, %v594_v62 }
  0x67   : > { %v301_v4 = vmul.f32 %v299_v63, %v283_v33  ;;  %v313_v5 = vmul.f32 %v311_v57, %v309_v0 }
  0x68   : > { %v302_v8 = vmul.f32 %v300_v1, %v284_v35  ;;  %v314_v9 = vmul.f32 %v312_v61, %v310_v2 }
  0x69   : > { %v315_v10 = vmul.f32 %v313_v5, %v289_v34 }
  0x6a   : > { %v316_v11 = vmul.f32 %v314_v9, %v290_v36 }
  0x6b   : > { %v317_v12 = vsub.f32 %v301_v4, %v315_v10 }
  0x6c   : > { %v318_v13 = vsub.f32 %v302_v8, %v316_v11 }
  0x6d   : > { %v337_v14 = vsel %vm335_vm2, %v317_v12, 0.0 }
  0x6e   : > { %v338_v15 = vsel %vm336_vm3, %v318_v13, 0.0 }
  0x6f   : > { %v340_v16 = vadd.f32 %v338_v15, %v337_v14 }
  0x71   : > { %347 = vst [vmem:[%s237_s6] sm:$0xff] %v340_v16 }
  0x72   : > { %682 = shalt.err (!%p679_p7)
}
  0x73   : > { %490 = dma.vmem_to_hbm [thread:$0]  (%p855_p12), %s362_s19, 128, %s364_s8, %s349_s12  }
  0x74 PF: > { %s375_s9 = sand.u32 1, %s734_s14   ;;  %p500_p9 = pnand %p468_p13, %p860_p0 }
  0x75   : > { %s376_s21 = scalar_lea.sflag [#allocation7], %s375_s9 }
  0x76   : > { %p501_p10 = pneg %p500_p9 }
  0x78   : > { %728 = dma.done.wait (%p501_p10), %s376_s21, 128  }
  0x79   : > { %730 = vsyncadd (%p501_p10), %s376_s21, 4294967168  ;;  %s23_s0 = sadd.s32 1, %s762_s0   ;;  %s981_s14 = smov %s738_s15 }
  0x7a   : > { %p20_p3 = scmp.ge.s32.totalorder %s23_s0, 4   ;;  %s982_s15 = smov %s742_s16 }
  0x7b   : > { %s983_s16 = smov %s849_s28  ;;  %s984_s17 = smov %s750_s18 }
  0x7c   : > { %s961_s18 = smov 0   ;;  %s985_s19 = smov %s758_s20 }
  0x7d   : > { %s986_s20 = smov %s988_s23  ;;  %22 = sbr.rel (!%p20_p3) target bundleno = 11 (0xb), region = 94 }
  0x82   :  { %382 = vsyncpa [#allocation6], 1 }
  0x83   :  { %384 = vsyncpa [#allocation6 + $0x1], 1 }
  0x84   :  { %385 = vsyncpa [#allocation9], 1 }
  0x85   :  { %387 = vsyncpa [#allocation9 + $0x1], 1 }
  0x86   :  { %388 = vsyncpa [#allocation7], 1 }
  0x87   :  { %390 = vsyncpa [#allocation7 + $0x1], 1 }

</bundles_post_ra>
